<compile_context>
chip_gen: v7x
topology: tpu7x:2x2x1
jax: 0.10.0
libtpu: 0.0.40
codegen_flags: <defaults>
</compile_context>

<pallas_src>
import jax
import jax.numpy as jnp
from jax.experimental import pallas as pl
from jax.experimental.pallas import tpu as pltpu


def _round_up(x, m):
    return (x + m - 1) // m * m


def mlp_kernel(x_ref, w1_ref, b1_ref, w2_ref, b2_ref, o_ref):
    # Fused hot path, all in VMEM: matmul -> bias -> relu -> matmul -> bias.
    x = x_ref[...]                                                  # (TB, n_in)      compute dtype
    h = jnp.dot(x, w1_ref[...], preferred_element_type=jnp.float32)  # (TB, n_hid_p)  f32 acc (MXU)
    h = h + b1_ref[...]                                             # f32 bias, broadcast (1, n_hid_p)
    h = jnp.maximum(h, 0.0)                                         # relu in f32 (v5e-safe)
    h = h.astype(w2_ref.dtype)                                      # back to MXU input dtype
    # Fold b2 into the accumulator (single VPU pass over the output tile).
    y = b2_ref[...] + jnp.dot(h, w2_ref[...], preferred_element_type=jnp.float32)
    o_ref[...] = y.astype(o_ref.dtype)                              # (TB, n_out_p) lane-dense store


def mlp_forward(x, w1, b1, w2, b2, *, compute_dtype=jnp.bfloat16, block_b=512):
    """x: (B, n_in); w1: (n_in, n_hidden); b1: (n_hidden,);
       w2: (n_hidden, n_out); b2: (n_out,).  Returns (B, n_out) f32."""
    B, n_in = x.shape
    n_hidden = w1.shape[1]
    n_out = w2.shape[1]

    # ---- lane-dense hidden / output dims, 8-aligned + tile-divisible batch ----
    n_hid_p = _round_up(n_hidden, 128)       # lane-dense intermediate (full vregs)
    n_out_p = _round_up(n_out, 128)          # lane-dense output (no masked vst)
    B_p = _round_up(B, 8)                    # sublane alignment
    tb = min(block_b, B_p)                   # batch tile
    B_p = _round_up(B_p, tb)                 # grid-divisible batch

    x_p = jnp.pad(x, ((0, B_p - B), (0, 0))) if B_p != B else x
    # Zero-pad hidden columns of W1 / b1 and hidden rows + output cols of W2 / b2.
    w1_p = jnp.pad(w1, ((0, 0), (0, n_hid_p - n_hidden))) if n_hid_p != n_hidden else w1
    b1_p = jnp.pad(b1, ((0, n_hid_p - n_hidden),)) if n_hid_p != n_hidden else b1
    w2_p = jnp.pad(w2, ((0, n_hid_p - n_hidden), (0, n_out_p - n_out))) \
        if (n_hid_p != n_hidden or n_out_p != n_out) else w2
    b2_p = jnp.pad(b2, ((0, n_out_p - n_out),)) if n_out_p != n_out else b2

    # MXU inputs in compute_dtype (bf16 on v6e/v7x); biases stay f32.
    x_c = x_p.astype(compute_dtype)
    w1_c = w1_p.astype(compute_dtype)
    w2_c = w2_p.astype(compute_dtype)
    b1_2d = b1_p.reshape(1, n_hid_p).astype(jnp.float32)
    b2_2d = b2_p.reshape(1, n_out_p).astype(jnp.float32)

    grid = (B_p // tb,)

    flops = 2 * B_p * n_in * n_hid_p + 2 * B_p * n_hid_p * n_out_p
    bytes_accessed = sum(int(a.size) * a.dtype.itemsize
                         for a in (x_c, w1_c, b1_2d, w2_c, b2_2d))
    bytes_accessed += B_p * n_out_p * 4  # f32 output

    out = pl.pallas_call(
        mlp_kernel,
        out_shape=jax.ShapeDtypeStruct((B_p, n_out_p), jnp.float32),
        grid=grid,
        in_specs=[
            pl.BlockSpec((tb, n_in), lambda i: (i, 0)),           # x: tiled over batch
            pl.BlockSpec((n_in, n_hid_p), lambda i: (0, 0)),      # W1: VMEM-resident
            pl.BlockSpec((1, n_hid_p), lambda i: (0, 0)),         # b1: VMEM-resident
            pl.BlockSpec((n_hid_p, n_out_p), lambda i: (0, 0)),   # W2: VMEM-resident
            pl.BlockSpec((1, n_out_p), lambda i: (0, 0)),         # b2: VMEM-resident
        ],
        out_specs=pl.BlockSpec((tb, n_out_p), lambda i: (i, 0)),
        compiler_params=pltpu.CompilerParams(
            dimension_semantics=("parallel",),
        ),
        cost_estimate=pl.CostEstimate(
            flops=flops, transcendentals=0, bytes_accessed=bytes_accessed),
    )(x_c, w1_c, b1_2d, w2_c, b2_2d)

    # Strip batch / lane padding outside the kernel.
    return out[:B, :n_out]


def reference_forward(x, w1, b1, w2, b2):
    h = jnp.maximum(x @ w1 + b1, 0.0)
    return h @ w2 + b2


if __name__ == "__main__":
    # Small shapes consistent with the module's forward: (batch, n_in) input.
    batch, n_in, n_hidden, n_out = 8, 32, 64, 8

    key = jax.random.PRNGKey(0)
    kx, kw1, kb1, kw2, kb2 = jax.random.split(key, 5)

    x = jax.random.normal(kx, (batch, n_in), dtype=jnp.float32)

    # Deterministic parameter init (PyTorch Linear-style uniform bounds).
    bound1 = 1.0 / jnp.sqrt(n_in)
    w1 = jax.random.uniform(kw1, (n_in, n_hidden), jnp.float32, -bound1, bound1)
    b1 = jax.random.uniform(kb1, (n_hidden,), jnp.float32, -bound1, bound1)

    bound2 = 1.0 / jnp.sqrt(n_hidden)
    w2 = jax.random.uniform(kw2, (n_hidden, n_out), jnp.float32, -bound2, bound2)
    b2 = jax.random.uniform(kb2, (n_out,), jnp.float32, -bound2, bound2)

    ref = reference_forward(x, w1, b1, w2, b2)

    # f32 path: bit-close to the reference (zero padding is exact in f32).
    out_f32 = jax.block_until_ready(
        mlp_forward(x, w1, b1, w2, b2, compute_dtype=jnp.float32))
    assert out_f32.shape == (batch, n_out)
    assert jnp.allclose(out_f32, ref, atol=1e-5, rtol=1e-5)

    # bf16 MXU path (v6e/v7x fast path): f32 accumulate, looser tolerance.
    out_bf16 = jax.block_until_ready(
        mlp_forward(x, w1, b1, w2, b2, compute_dtype=jnp.bfloat16))
    assert out_bf16.shape == (batch, n_out)
    assert jnp.allclose(out_bf16, ref, atol=5e-2, rtol=5e-2)

    print("KERNEL_OK")
</pallas_src>

<mosaic_0001>
module attributes {stable_mosaic.version = 11 : i64} {
  func.func @mlp_kernel(%arg0: i32, %arg1: memref<8x32xf32, #tpu.memory_space<vmem>>, %arg2: memref<32x128xf32, #tpu.memory_space<vmem>>, %arg3: memref<1x128xf32, #tpu.memory_space<vmem>>, %arg4: memref<128x128xf32, #tpu.memory_space<vmem>>, %arg5: memref<1x128xf32, #tpu.memory_space<vmem>>, %arg6: memref<8x128xf32, #tpu.memory_space<vmem>>) attributes {dimension_semantics = [#tpu.dimension_semantics<parallel>], iteration_bounds = array<i64: 1>, scalar_prefetch = 0 : i64, scratch_operands = 0 : i64, tpu.core_type = #tpu.core_type<tc>, window_params = [{transform_indices = @transform_0, window_bounds = array<i64: 8, 32>}, {pipeline_mode = #tpu.pipeline_mode<synchronous>, transform_indices = @transform_1, window_bounds = array<i64: 32, 128>}, {pipeline_mode = #tpu.pipeline_mode<synchronous>, transform_indices = @transform_2, window_bounds = array<i64: 1, 128>}, {pipeline_mode = #tpu.pipeline_mode<synchronous>, transform_indices = @transform_3, window_bounds = array<i64: 128, 128>}, {pipeline_mode = #tpu.pipeline_mode<synchronous>, transform_indices = @transform_4, window_bounds = array<i64: 1, 128>}, {transform_indices = @transform_5, window_bounds = array<i64: 8, 128>}]} {
    %c0 = arith.constant 0 : index
    %c0_0 = arith.constant 0 : index
    %0 = vector.load %arg1[%c0, %c0_0] : memref<8x32xf32, #tpu.memory_space<vmem>>, vector<8x32xf32>
    %c0_1 = arith.constant 0 : index
    %c0_2 = arith.constant 0 : index
    %1 = vector.load %arg2[%c0_1, %c0_2] : memref<32x128xf32, #tpu.memory_space<vmem>>, vector<32x128xf32>
    %cst = arith.constant dense<0.000000e+00> : vector<8x128xf32>
    %2 = tpu.matmul %0, %1, %cst {dimension_numbers = #tpu.dot_dimension_numbers<[1], [0], [0], [1], [0, 0, 1, 1], [], []>} : vector<8x32xf32>, vector<32x128xf32>, vector<8x128xf32> -> vector<8x128xf32>
    %c0_3 = arith.constant 0 : index
    %c0_4 = arith.constant 0 : index
    %3 = vector.load %arg3[%c0_3, %c0_4] : memref<1x128xf32, #tpu.memory_space<vmem>>, vector<1x128xf32>
    %4 = vector.broadcast %3 : vector<1x128xf32> to vector<8x128xf32>
    %5 = arith.addf %2, %4 : vector<8x128xf32>
    %cst_5 = arith.constant 0.000000e+00 : f32
    %6 = vector.broadcast %cst_5 : f32 to vector<8x128xf32>
    %7 = arith.maximumf %5, %6 : vector<8x128xf32>
    %c0_6 = arith.constant 0 : index
    %c0_7 = arith.constant 0 : index
    %8 = vector.load %arg5[%c0_6, %c0_7] : memref<1x128xf32, #tpu.memory_space<vmem>>, vector<1x128xf32>
    %c0_8 = arith.constant 0 : index
    %c0_9 = arith.constant 0 : index
    %9 = vector.load %arg4[%c0_8, %c0_9] : memref<128x128xf32, #tpu.memory_space<vmem>>, vector<128x128xf32>
    %cst_10 = arith.constant dense<0.000000e+00> : vector<8x128xf32>
    %10 = tpu.matmul %7, %9, %cst_10 {dimension_numbers = #tpu.dot_dimension_numbers<[1], [0], [0], [1], [0, 0, 1, 1], [], []>} : vector<8x128xf32>, vector<128x128xf32>, vector<8x128xf32> -> vector<8x128xf32>
    %11 = vector.broadcast %8 : vector<1x128xf32> to vector<8x128xf32>
    %12 = arith.addf %11, %10 : vector<8x128xf32>
    %c0_11 = arith.constant 0 : index
    %c0_12 = arith.constant 0 : index
    %13 = vector.load %arg6[%c0_11, %c0_12] : memref<8x128xf32, #tpu.memory_space<vmem>>, vector<8x128xf32>
    tpu.vector_store %arg6[%c0_11, %c0_12], %12 {strides = array<i32>} : memref<8x128xf32, #tpu.memory_space<vmem>>, vector<8x128xf32>,
    return
  }
  func.func @transform_0(%arg0: i32) -> (i32, i32) {
    %c0_i32 = arith.constant 0 : i32
    %c0_i32_0 = arith.constant 0 : i32
    return %arg0, %c0_i32 : i32, i32
  }
  func.func @transform_1(%arg0: i32) -> (i32, i32) {
    %c0_i32 = arith.constant 0 : i32
    %c0_i32_0 = arith.constant 0 : i32
    %c0_i32_1 = arith.constant 0 : i32
    return %c0_i32, %c0_i32_0 : i32, i32
  }
  func.func @transform_2(%arg0: i32) -> (i32, i32) {
    %c0_i32 = arith.constant 0 : i32
    %c0_i32_0 = arith.constant 0 : i32
    %c0_i32_1 = arith.constant 0 : i32
    return %c0_i32, %c0_i32_0 : i32, i32
  }
  func.func @transform_3(%arg0: i32) -> (i32, i32) {
    %c0_i32 = arith.constant 0 : i32
    %c0_i32_0 = arith.constant 0 : i32
    %c0_i32_1 = arith.constant 0 : i32
    return %c0_i32, %c0_i32_0 : i32, i32
  }
  func.func @transform_4(%arg0: i32) -> (i32, i32) {
    %c0_i32 = arith.constant 0 : i32
    %c0_i32_0 = arith.constant 0 : i32
    %c0_i32_1 = arith.constant 0 : i32
    return %c0_i32, %c0_i32_0 : i32, i32
  }
  func.func @transform_5(%arg0: i32) -> (i32, i32) {
    %c0_i32 = arith.constant 0 : i32
    %c0_i32_0 = arith.constant 0 : i32
    return %arg0, %c0_i32 : i32, i32
  }
}

</mosaic_0001>

<bundles_post_ra>
// kernel: tpu_custom_call.1
= control target key start
LH: loop header
LB: loop body
LE: loop exit
PB: predicated region body
PF: predicated region fallthrough
CT: control target
= control target key end

     0   :  { %10 = vsyncpa [#allocation3], 0  ;;  %s561_s0 = inlined_call_operand.hbm [shape: f32[8,32], index: 0, kind: input, shape index: {}]   ;;  %s562_s1 = inlined_call_operand.hbm [shape: f32[32,128], index: 1, kind: input, shape index: {}]   ;;  %s563_s2 = inlined_call_operand.vmem [shape: f32[1,128], index: 2, kind: input, shape index: {}]   ;;  %s564_s3 = inlined_call_operand.hbm [shape: f32[128,128], index: 3, kind: input, shape index: {}]   ;;  %s565_s4 = inlined_call_operand.vmem [shape: f32[1,128], index: 4, kind: input, shape index: {}]   ;;  %s566_s5 = inlined_call_operand.hbm [shape: f32[8,128], index: 5, kind: output, shape index: {}]  }
   0x1   :  { %11 = vsyncpa [#allocation6], 0 }
   0x2   :  { %12 = vsyncpa [#allocation4], 0  ;;  %s462_s18 = smov [#allocation5]   ;;  %s368_s22 = scalar_lea.hbm %s562_s1, 512 }
   0x3   :  { %s28_s19 = sshll.u32 %s462_s18, 4  ;;  %p369_p0 = scmp.ne.s32.totalorder %s562_s1, %s368_s22  ;;  %s29_s19 = int_to_ptr.vmem [resolvable:$true] %s28_s19 }
   0x4   :  { %p372_p1 = scmp.lt.u32.totalorder %s368_s22, %s562_s1 }
   0x6   :  { %p374_p2 = pnand %p372_p1, %p369_p0 }
   0x8   :  { %377 = shalt.err (!%p374_p2)
}
   0x9   :  { %s378_s27 = scalar_lea.vmem %s29_s19, 512  ;;  %p383_p4 = scmp.lt.s32.totalorder %s29_s19, %s29_s19 }
   0xa   :  { %p379_p3 = scmp.ne.s32.totalorder %s29_s19, %s378_s27  ;;  %p384_p5 = scmp.lt.s32.totalorder %s378_s27, %s378_s27 }
   0xc   :  { %p385_p6 = por %p384_p5, %p383_p4 }
   0xe   :  { %p386_p7 = pnand %p385_p6, %p379_p3 }
  0x10   :  { %389 = shalt.err (!%p386_p7)
}
  0x11   :  { %s463_s28 = smov 128   ;;  %s464_s29 = smov 8  }
  0x12   :  { %34 = dma.hbm_to_vmem [thread:$0]  %s562_s1, 512, %s29_s19, [#allocation6], %s463_s28, %s463_s28, %s464_s29  }
  0x13   :  { %s465_s7 = smov [#allocation2]   ;;  %s466_s9 = smov [#allocation7]  }
  0x14   :  { %s19_s8 = sshll.u32 %s465_s7, 4  ;;  %s42_s10 = sshll.u32 %s466_s9, 4  ;;  %s20_s8 = int_to_ptr.vmem [resolvable:$true] %s19_s8  ;;  %s43_s10 = int_to_ptr.vmem [resolvable:$true] %s42_s10 }
  0x15   :  { %s390_s13 = scalar_lea.hbm %s561_s0, 128 }
  0x16   :  { %p391_p8 = scmp.ne.s32.totalorder %s561_s0, %s390_s13  ;;  %p394_p9 = scmp.lt.u32.totalorder %s390_s13, %s561_s0 }
  0x18   :  { %p396_p10 = pnand %p394_p9, %p391_p8 }
  0x1a   :  { %399 = shalt.err (!%p396_p10)
}
  0x1b   :  { %s400_s1 = scalar_lea.vmem %s20_s8, 128  ;;  %p405_p12 = scmp.lt.s32.totalorder %s20_s8, %s20_s8 }
  0x1c   :  { %p401_p11 = scmp.ne.s32.totalorder %s20_s8, %s400_s1  ;;  %p406_p13 = scmp.lt.s32.totalorder %s400_s1, %s400_s1 }
  0x1e   :  { %p407_p0 = por %p406_p13, %p405_p12 }
  0x20   :  { %p408_p1 = pnand %p407_p0, %p401_p11 }
  0x22   :  { %411 = shalt.err (!%p408_p1)
}
  0x23   :  { %22 = dma.hbm_to_vmem [thread:$0]  %s561_s0, 128, %s20_s8, [#allocation3]  }
  0x24   :  { %s412_s22 = scalar_lea.hbm %s564_s3, 2048 }
  0x25   :  { %p413_p2 = scmp.ne.s32.totalorder %s564_s3, %s412_s22  ;;  %p416_p3 = scmp.lt.u32.totalorder %s412_s22, %s564_s3 }
  0x27   :  { %p418_p4 = pnand %p416_p3, %p413_p2 }
  0x29   :  { %421 = shalt.err (!%p418_p4)
}
  0x2a   :  { %s422_s27 = scalar_lea.vmem %s43_s10, 2048  ;;  %p427_p6 = scmp.lt.s32.totalorder %s43_s10, %s43_s10 }
  0x2b   :  { %p423_p5 = scmp.ne.s32.totalorder %s43_s10, %s422_s27  ;;  %p428_p7 = scmp.lt.s32.totalorder %s422_s27, %s422_s27 }
  0x2d   :  { %p429_p8 = por %p428_p7, %p427_p6 }
  0x2f   :  { %p430_p9 = pnand %p429_p8, %p423_p5 }
  0x31   :  { %433 = shalt.err (!%p430_p9)
}
  0x32   :  { %48 = dma.hbm_to_vmem [thread:$0]  %s564_s3, 2048, %s43_s10, [#allocation6], %s463_s28, %s463_s28, %s464_s29  }
  0x33   :  { %456 = dma.done.wait [#allocation3], 128  }
  0x34   :  { %457 = vsyncadd [#allocation3], 4294967168 }
  0x35   :  { %458 = dma.done.wait [#allocation6], 2560  }
  0x36   :  { %459 = vsyncadd [#allocation6], 4294964736  ;;  %v467_v0 = vmov 0.0|0.0   ;;  %vm468_vm0 = vmmov 0   ;;  %v469_v1 = vmov 0.0   ;;  %v61_v2 = vld [vmem:[#allocation5] sm:$0xff] }
  0x37   :  { %329 = vmatprep.subr.bf16.mxu0 %v467_v0  ;;  %291 = vmatprep.mubr.msk.f32.mxu0 %vm468_vm0, %v469_v1  ;;  %v62_v3 = vld [vmem:[#allocation5 + $0x8] sm:$0xff]  ;;  %v63_v4 = vld [vmem:[#allocation5 + $0x10] sm:$0xff]  ;;  %v64_v6 = vld [vmem:[#allocation5 + $0x18] sm:$0xff]  ;;  %vm72_vm1 = vcmask 261120   ;;  %s470_s7 = smov [#allocation8]  }
  0x38   :  { %335 = vmatprep.subr.bf16.mxu1 %v467_v0  ;;  %326 = vmatprep.mubr.msk.f32.mxu1 %vm468_vm0, %v469_v1  ;;  %v330_v5 = vpack.c.bf16 %v62_v3, %v61_v2  ;;  %v148_v7 = vld [vmem:[#allocation7] sm:$0xff]  ;;  %v149_v8 = vld [vmem:[#allocation7 + $0x8] sm:$0xff]  ;;  %v150_v9 = vld [vmem:[#allocation7 + $0x10] sm:$0xff]  ;;  %v333_v11 = vpack.c.bf16 %v64_v6, %v63_v4  ;;  %s248_s8 = sshll.u32 %s470_s7, 4  ;;  %s249_s8 = int_to_ptr.vmem [resolvable:$true] %s248_s8 }
  0x39   :  { %v151_v10 = vld [vmem:[#allocation7 + $0x18] sm:$0xff]  ;;  %v336_v12 = vpack.c.bf16 %v149_v8, %v148_v7  ;;  %v152_v14 = vld [vmem:[#allocation7 + $0x20] sm:$0xff]  ;;  %v153_v15 = vld [vmem:[#allocation7 + $0x28] sm:$0xff]  ;;  %s434_s9 = scalar_lea.vmem %s249_s8, 128  ;;  %p439_p11 = scmp.lt.s32.totalorder %s249_s8, %s249_s8 }
  0x3a   :  { %331 = vmatpush3.bf16.msra.mxu0 %v330_v5  ;;  %v339_v13 = vpack.c.bf16 %v151_v10, %v150_v9  ;;  %v60_v16 = vld [vmem:[#allocation2] sm:$0xff]  ;;  %v342_v17 = vpack.c.bf16 %v153_v15, %v152_v14  ;;  %v154_v18 = vld [vmem:[#allocation7 + $0x30] sm:$0xff]  ;;  %v156_v21 = vld [vmem:[#allocation7 + $0x40] sm:$0xff]  ;;  %p435_p10 = scmp.ne.s32.totalorder %s249_s8, %s434_s9  ;;  %p440_p12 = scmp.lt.s32.totalorder %s434_s9, %s434_s9 }
  0x3b   :  { %332 = vmatprep.subr.bf16.mxu0 %v467_v0  ;;  %337 = vmatpush3.bf16.msra.mxu1 %v336_v12  ;;  %v155_v19 = vld [vmem:[#allocation7 + $0x38] sm:$0xff]  ;;  %v157_v22 = vld [vmem:[#allocation7 + $0x48] sm:$0xff]  ;;  %v158_v24 = vld [vmem:[#allocation7 + $0x50] sm:$0xff] }
  0x3c   :  { %338 = vmatprep.subr.bf16.mxu1 %v467_v0  ;;  %v345_v20 = vpack.c.bf16 %v155_v19, %v154_v18  ;;  %v348_v23 = vpack.c.bf16 %v157_v22, %v156_v21  ;;  %v159_v25 = vld [vmem:[#allocation7 + $0x58] sm:$0xff]  ;;  %v160_v27 = vld [vmem:[#allocation7 + $0x60] sm:$0xff]  ;;  %v161_v28 = vld [vmem:[#allocation7 + $0x68] sm:$0xff]  ;;  %p441_p13 = por %p440_p12, %p439_p11 }
  0x3d   :  { %v351_v26 = vpack.c.bf16 %v159_v25, %v158_v24  ;;  %v354_v29 = vpack.c.bf16 %v161_v28, %v160_v27  ;;  %v162_v30 = vld [vmem:[#allocation7 + $0x70] sm:$0xff]  ;;  %v163_v31 = vld [vmem:[#allocation7 + $0x78] sm:$0xff] }
  0x3e   :  { %334 = vmatpush3.bf16.msra.mxu0 %v333_v11  ;;  %v357_v32 = vpack.c.bf16 %v163_v31, %v162_v30  ;;  %v258_v33 = vld [vmem:[%s563_s2] ss:$0 sm:$0xff]  ;;  %p442_p0 = pnand %p441_p13, %p435_p10 }
  0x3f   :  { %340 = vmatpush3.bf16.msra.mxu1 %v339_v13  ;;  %v260_v38 = vld [vmem:[%s565_s4] ss:$0 sm:$0xff] }
  0x40   :  { %341 = vmatprep.subr.bf16.mxu1 %v467_v0 }
  0x41   :  { %292 = vmatmul.mubr.msk.f32.vlgmr.msra.gmra.mrb[0].mxu0 %vm72_vm1, %v60_v16 }
  0x43   :  { %343 = vmatpush3.bf16.msra.mxu1 %v342_v17 }
  0x44   :  { %344 = vmatprep.subr.bf16.mxu1 %v467_v0 }
  0x47   :  { %346 = vmatpush3.bf16.msra.mxu1 %v345_v20 }
  0x48   :  { %347 = vmatprep.subr.bf16.mxu1 %v467_v0 }
  0x4b   :  { %349 = vmatpush3.bf16.msra.mxu1 %v348_v23 }
  0x4c   :  { %350 = vmatprep.subr.bf16.mxu1 %v467_v0 }
  0x4f   :  { %352 = vmatpush3.bf16.msra.mxu1 %v351_v26 }
  0x50   :  { %353 = vmatprep.subr.bf16.mxu1 %v467_v0 }
  0x53   :  { %355 = vmatpush3.bf16.msra.mxu1 %v354_v29 }
  0x54   :  { %356 = vmatprep.subr.bf16.mxu1 %v467_v0 }
  0x57   :  { %358 = vmatpush3.bf16.msra.mxu1 %v357_v32 }
 0x114   :  { %v142_v34 = vpop.f32.mrb[0].mxu0 }
 0x115   :  { %v143_v35 = vadd.f32 %v258_v33, %v142_v34  ;;  %v293_v36 = vpop.f32.mrb[1].mxu0 }
 0x117   :  { %v146_v37 = vmax.f32 %v143_v35, 0.0 }
 0x119   :  { %327 = vmatmul.mubr.f32.vlgmr.msra.gmra.mrb[0].mxu1 %v146_v37 }
 0x1ec   :  { %v230_v39 = vpop.f32.mrb[0].mxu1 }
 0x1ed   :  { %v240_v40 = vadd.f32 %v260_v38, %v230_v39  ;;  %v328_v41 = vpop.f32.mrb[1].mxu1 }
 0x1ef   :  { %241 = vst [vmem:[#allocation8] sm:$0xff] %v240_v40 }
 0x1f0   :  { %445 = shalt.err (!%p442_p0)
}
 0x1f1   :  { %s446_s11 = scalar_lea.hbm %s566_s5, 128 }
 0x1f2   :  { %p447_p1 = scmp.ne.s32.totalorder %s566_s5, %s446_s11  ;;  %p450_p2 = scmp.lt.u32.totalorder %s446_s11, %s566_s5 }
 0x1f4   :  { %p452_p3 = pnand %p450_p2, %p447_p1 }
 0x1f6   :  { %455 = shalt.err (!%p452_p3)
}
 0x1f7   :  { %251 = dma.vmem_to_hbm [thread:$0]  %s249_s8, 128, %s566_s5, [#allocation4]  }
 0x1f8   :  { %460 = dma.done.wait [#allocation4], 128  }
 0x1f9   :  { %461 = vsyncadd [#allocation4], 4294967168 }
 0x1fa   :  { %255 = vsyncpa [#allocation3], 1 }
 0x1fb   :  { %256 = vsyncpa [#allocation6], 1 }
 0x1fc   :  { %257 = vsyncpa [#allocation4], 1 }

</bundles_post_ra>
